<compile_context>
chip_gen: v7x
topology: tpu7x:2x2x1
jax: 0.10.0
libtpu: 0.0.40
codegen_flags: <defaults>
</compile_context>

<pallas_src>
from functools import partial

import jax
import jax.numpy as jnp
from jax.experimental import pallas as pl
from jax.experimental.pallas import tpu as pltpu


def _round_up(n, m):
    return ((n + m - 1) // m) * m


def _policy_kernel(x_ref, w_ref, mh_ref, noise_ref, eps_ref, out_ref,
                   *, n_in, r_w2, r_b, H, A):
    # ---- shared = Dropout(ReLU(Linear(x))) -> Dropout(ReLU(Linear(.)))  (dropout = identity)
    x = x_ref[...]
    w1 = w_ref[0:n_in, :]
    w2 = w_ref[r_w2:r_w2 + H, :]
    b1 = w_ref[r_b:r_b + 1, :]
    b2 = w_ref[r_b + 1:r_b + 2, :]

    h1 = jnp.maximum(jnp.dot(x, w1, preferred_element_type=jnp.float32) + b1, 0.0)
    h2 = jnp.maximum(jnp.dot(h1, w2, preferred_element_type=jnp.float32) + b2, 0.0)

    # ---- mean head (pre-squash) == action_sample
    wm = mh_ref[0:H, :]
    bm = mh_ref[H:H + 1, :]
    scale = mh_ref[H + 1:H + 2, :]
    bias = mh_ref[H + 2:H + 3, :]
    high = mh_ref[H + 3:H + 4, :]
    low = mh_ref[H + 4:H + 5, :]

    m = jnp.dot(h2, wm, preferred_element_type=jnp.float32) + bm

    # mean = tanh(m) * action_scale + action_bias    (tanh goes to the EUP slot)
    mean = jnp.tanh(m) * scale + bias

    # noise = clamp(ou_sample, -0.5, 0.5) * epsilon   (epsilon is an SMEM scalar)
    noise = jnp.clip(noise_ref[...], -0.5, 0.5) * eps_ref[0, 0]

    # action = max(min(mean + noise, high), low)
    action = jnp.maximum(jnp.minimum(mean + noise, high), low)

    # Single lane-dense writeback: [action | mean | action_sample]  -> (B, 3*A)
    out_ref[...] = jnp.concatenate([action, mean, m], axis=-1)


def deterministic_policy_forward(state, params, ou_noise, epsilon):
    """Returns (action, 0.0, mean, zeros(B), action_sample) like the PyTorch module."""
    B, n_in = state.shape
    H = params["hidden_dim"]
    A = params["num_actions"]
    r_w2 = params["r_w2"]
    r_b = params["r_b"]

    vmem = pl.BlockSpec(memory_space=pltpu.MemorySpace.VMEM)
    smem = pl.BlockSpec(memory_space=pltpu.MemorySpace.SMEM)

    kernel = partial(_policy_kernel, n_in=n_in, r_w2=r_w2, r_b=r_b, H=H, A=A)

    packed_out = pl.pallas_call(
        kernel,
        out_shape=jax.ShapeDtypeStruct((B, 3 * A), jnp.float32),
        in_specs=[vmem, vmem, vmem, vmem, smem],
        out_specs=vmem,
    )(
        state.astype(jnp.float32),
        params["w_slab"],                                  # (r_b + 8, H): w1|w2|b1|b2
        params["mh_slab"],                                 # (H_pad + 8, A): wm|bm|scale|bias|high|low
        ou_noise.reshape(1, A).astype(jnp.float32),        # raw OU sample
        jnp.asarray(epsilon, jnp.float32).reshape(1, 1),   # epsilon scalar (traced)
    )

    action = packed_out[:, 0:A]
    mean = packed_out[:, A:2 * A]
    action_sample = packed_out[:, 2 * A:3 * A]
    return (action,
            jnp.float32(0.0),
            mean,
            jnp.zeros((B,), jnp.float32),
            action_sample)


def _linear_init(key, fan_in, fan_out):
    # PyTorch nn.Linear default: U(-1/sqrt(fan_in), 1/sqrt(fan_in)) for W and b.
    kw, kb = jax.random.split(key)
    bound = 1.0 / jnp.sqrt(jnp.float32(fan_in))
    w = jax.random.uniform(kw, (fan_in, fan_out), jnp.float32, -bound, bound)
    b = jax.random.uniform(kb, (1, fan_out), jnp.float32, -bound, bound)
    return w, b


def make_params(key, num_inputs, num_actions, hidden_dim, action_high, action_low):
    k1, k2, k3 = jax.random.split(key, 3)
    w1, b1 = _linear_init(k1, num_inputs, hidden_dim)
    w2, b2 = _linear_init(k2, hidden_dim, hidden_dim)
    wm, bm = _linear_init(k3, hidden_dim, num_actions)
    high = jnp.asarray(action_high, jnp.float32).reshape(1, num_actions)
    low = jnp.asarray(action_low, jnp.float32).reshape(1, num_actions)
    scale = (high - low) / 2.0
    bias = (high + low) / 2.0

    # ---- one-time static packing (hoisted out of the per-call wrapper) ----
    n_in_pad = _round_up(num_inputs, 8)
    h_pad = _round_up(hidden_dim, 8)
    r_w2 = n_in_pad                    # w2 starts at a sublane-tile-aligned offset
    r_b = n_in_pad + h_pad             # bias rows start tile-aligned too

    # (r_b + 8, hidden_dim): rows [0:n_in]=w1, [r_w2:r_w2+H]=w2, [r_b]=b1, [r_b+1]=b2, rest 0.
    w_slab = jnp.zeros((r_b + 8, hidden_dim), jnp.float32)
    w_slab = w_slab.at[0:num_inputs, :].set(w1)
    w_slab = w_slab.at[r_w2:r_w2 + hidden_dim, :].set(w2)
    w_slab = w_slab.at[r_b:r_b + 1, :].set(b1)
    w_slab = w_slab.at[r_b + 1:r_b + 2, :].set(b2)

    # (h_pad + 8, A): rows [0:H]=wm, then bm, scale, bias, high, low, pad.
    mh_slab = jnp.zeros((h_pad + 8, num_actions), jnp.float32)
    mh_slab = mh_slab.at[0:hidden_dim, :].set(wm)
    mh_slab = mh_slab.at[hidden_dim + 0:hidden_dim + 1, :].set(bm)
    mh_slab = mh_slab.at[hidden_dim + 1:hidden_dim + 2, :].set(scale)
    mh_slab = mh_slab.at[hidden_dim + 2:hidden_dim + 3, :].set(bias)
    mh_slab = mh_slab.at[hidden_dim + 3:hidden_dim + 4, :].set(high)
    mh_slab = mh_slab.at[hidden_dim + 4:hidden_dim + 5, :].set(low)

    return {
        # raw params (kept for reference / evaluate-style use)
        "w1": w1, "b1": b1, "w2": w2, "b2": b2, "wm": wm, "bm": bm,
        "action_scale": scale, "action_bias": bias,
        "action_high": high, "action_low": low,
        # pre-packed kernel operands + static layout metadata
        "w_slab": w_slab, "mh_slab": mh_slab,
        "r_w2": r_w2, "r_b": r_b,
        "hidden_dim": hidden_dim, "num_actions": num_actions,
    }


def ou_sample(key, size, theta=0.3, mu=0.0, sigma=0.2, dt=0.05):
    # One OU step from x0 = 0 (matches a freshly-constructed OUProcess.sample()).
    x0 = jnp.zeros((size,), jnp.float32)
    dx = theta * (mu - x0) * dt + sigma * jnp.sqrt(jnp.float32(dt)) * jax.random.normal(
        key, (size,), jnp.float32)
    return x0 + dx


if __name__ == "__main__":
    key = jax.random.PRNGKey(0)
    k_params, k_state, k_noise = jax.random.split(key, 3)

    batch = 8
    num_inputs = 16
    hidden_dim = 32
    num_actions = 4
    epsilon = 1.0

    action_high = jnp.full((num_actions,), 2.0, jnp.float32)
    action_low = jnp.full((num_actions,), -2.0, jnp.float32)

    params = make_params(k_params, num_inputs, num_actions, hidden_dim,
                         action_high, action_low)
    state = jax.random.normal(k_state, (batch, num_inputs), jnp.float32)
    noise = ou_sample(k_noise, num_actions)

    outs = deterministic_policy_forward(state, params, noise, epsilon)
    outs = jax.block_until_ready(outs)

    action, zero_scalar, mean, zeros_b, action_sample = outs
    assert action.shape == (batch, num_actions)
    assert mean.shape == (batch, num_actions)
    assert action_sample.shape == (batch, num_actions)
    assert zeros_b.shape == (batch,)

    # Quick numerical cross-check against a pure-JAX reference.
    h1 = jnp.maximum(state @ params["w1"] + params["b1"], 0.0)
    h2 = jnp.maximum(h1 @ params["w2"] + params["b2"], 0.0)
    m_ref = h2 @ params["wm"] + params["bm"]
    mean_ref = jnp.tanh(m_ref) * params["action_scale"] + params["action_bias"]
    noise_ref = jnp.clip(noise.reshape(1, -1), -0.5, 0.5) * epsilon
    action_ref = jnp.maximum(jnp.minimum(mean_ref + noise_ref, params["action_high"]),
                             params["action_low"])
    assert jnp.allclose(action, action_ref, atol=1e-5)
    assert jnp.allclose(mean, mean_ref, atol=1e-5)
    assert jnp.allclose(action_sample, m_ref, atol=1e-5)

    print("KERNEL_OK")
</pallas_src>

<mosaic_0001>
module attributes {stable_mosaic.version = 11 : i64} {
  func.func @_policy_kernel(%arg0: memref<8x16xf32, #tpu.memory_space<vmem>>, %arg1: memref<56x32xf32, #tpu.memory_space<vmem>>, %arg2: memref<40x4xf32, #tpu.memory_space<vmem>>, %arg3: memref<1x4xf32, #tpu.memory_space<vmem>>, %arg4: memref<1x1xf32, #tpu.memory_space<smem>>, %arg5: memref<8x12xf32, #tpu.memory_space<vmem>>) attributes {dimension_semantics = [], scalar_prefetch = 0 : i64, scratch_operands = 0 : i64, tpu.core_type = #tpu.core_type<tc>} {
    %c0 = arith.constant 0 : index
    %c0_0 = arith.constant 0 : index
    %0 = vector.load %arg0[%c0, %c0_0] : memref<8x16xf32, #tpu.memory_space<vmem>>, vector<8x16xf32>
    %c0_1 = arith.constant 0 : index
    %c0_2 = arith.constant 0 : index
    %1 = vector.load %arg1[%c0_1, %c0_2] : memref<56x32xf32, #tpu.memory_space<vmem>>, vector<16x32xf32>
    %c16 = arith.constant 16 : index
    %c0_3 = arith.constant 0 : index
    %2 = vector.load %arg1[%c16, %c0_3] : memref<56x32xf32, #tpu.memory_space<vmem>>, vector<32x32xf32>
    %c48 = arith.constant 48 : index
    %c0_4 = arith.constant 0 : index
    %3 = vector.load %arg1[%c48, %c0_4] : memref<56x32xf32, #tpu.memory_space<vmem>>, vector<1x32xf32>
    %c49 = arith.constant 49 : index
    %c0_5 = arith.constant 0 : index
    %4 = vector.load %arg1[%c49, %c0_5] : memref<56x32xf32, #tpu.memory_space<vmem>>, vector<1x32xf32>
    %cst = arith.constant dense<0.000000e+00> : vector<8x32xf32>
    %5 = tpu.matmul %0, %1, %cst {dimension_numbers = #tpu.dot_dimension_numbers<[1], [0], [0], [1], [0, 0, 1, 1], [], []>} : vector<8x16xf32>, vector<16x32xf32>, vector<8x32xf32> -> vector<8x32xf32>
    %6 = vector.broadcast %3 : vector<1x32xf32> to vector<8x32xf32>
    %7 = arith.addf %5, %6 : vector<8x32xf32>
    %cst_6 = arith.constant 0.000000e+00 : f32
    %8 = vector.broadcast %cst_6 : f32 to vector<8x32xf32>
    %9 = arith.maximumf %7, %8 : vector<8x32xf32>
    %cst_7 = arith.constant dense<0.000000e+00> : vector<8x32xf32>
    %10 = tpu.matmul %9, %2, %cst_7 {dimension_numbers = #tpu.dot_dimension_numbers<[1], [0], [0], [1], [0, 0, 1, 1], [], []>} : vector<8x32xf32>, vector<32x32xf32>, vector<8x32xf32> -> vector<8x32xf32>
    %11 = vector.broadcast %4 : vector<1x32xf32> to vector<8x32xf32>
    %12 = arith.addf %10, %11 : vector<8x32xf32>
    %cst_8 = arith.constant 0.000000e+00 : f32
    %13 = vector.broadcast %cst_8 : f32 to vector<8x32xf32>
    %14 = arith.maximumf %12, %13 : vector<8x32xf32>
    %c0_9 = arith.constant 0 : index
    %c0_10 = arith.constant 0 : index
    %15 = vector.load %arg2[%c0_9, %c0_10] : memref<40x4xf32, #tpu.memory_space<vmem>>, vector<32x4xf32>
    %c32 = arith.constant 32 : index
    %c0_11 = arith.constant 0 : index
    %16 = vector.load %arg2[%c32, %c0_11] : memref<40x4xf32, #tpu.memory_space<vmem>>, vector<1x4xf32>
    %c33 = arith.constant 33 : index
    %c0_12 = arith.constant 0 : index
    %17 = vector.load %arg2[%c33, %c0_12] : memref<40x4xf32, #tpu.memory_space<vmem>>, vector<1x4xf32>
    %c34 = arith.constant 34 : index
    %c0_13 = arith.constant 0 : index
    %18 = vector.load %arg2[%c34, %c0_13] : memref<40x4xf32, #tpu.memory_space<vmem>>, vector<1x4xf32>
    %c35 = arith.constant 35 : index
    %c0_14 = arith.constant 0 : index
    %19 = vector.load %arg2[%c35, %c0_14] : memref<40x4xf32, #tpu.memory_space<vmem>>, vector<1x4xf32>
    %c36 = arith.constant 36 : index
    %c0_15 = arith.constant 0 : index
    %20 = vector.load %arg2[%c36, %c0_15] : memref<40x4xf32, #tpu.memory_space<vmem>>, vector<1x4xf32>
    %cst_16 = arith.constant dense<0.000000e+00> : vector<8x4xf32>
    %21 = tpu.matmul %14, %15, %cst_16 {dimension_numbers = #tpu.dot_dimension_numbers<[1], [0], [0], [1], [0, 0, 1, 1], [], []>} : vector<8x32xf32>, vector<32x4xf32>, vector<8x4xf32> -> vector<8x4xf32>
    %22 = vector.broadcast %16 : vector<1x4xf32> to vector<8x4xf32>
    %23 = arith.addf %21, %22 : vector<8x4xf32>
    %24 = math.tanh %23 : vector<8x4xf32>
    %25 = vector.broadcast %17 : vector<1x4xf32> to vector<8x4xf32>
    %26 = arith.mulf %24, %25 : vector<8x4xf32>
    %27 = vector.broadcast %18 : vector<1x4xf32> to vector<8x4xf32>
    %28 = arith.addf %26, %27 : vector<8x4xf32>
    %c0_17 = arith.constant 0 : index
    %c0_18 = arith.constant 0 : index
    %29 = vector.load %arg3[%c0_17, %c0_18] : memref<1x4xf32, #tpu.memory_space<vmem>>, vector<1x4xf32>
    %cst_19 = arith.constant -5.000000e-01 : f32
    %cst_20 = arith.constant 5.000000e-01 : f32
    %30 = vector.broadcast %cst_19 : f32 to vector<1x4xf32>
    %31 = arith.maximumf %30, %29 : vector<1x4xf32>
    %32 = vector.broadcast %cst_20 : f32 to vector<1x4xf32>
    %33 = arith.minimumf %32, %31 : vector<1x4xf32>
    %c0_21 = arith.constant 0 : index
    %c0_22 = arith.constant 0 : index
    %34 = memref.load %arg4[%c0_21, %c0_22] : memref<1x1xf32, #tpu.memory_space<smem>>
    %35 = vector.broadcast %34 : f32 to vector<1x4xf32>
    %36 = arith.mulf %33, %35 : vector<1x4xf32>
    %37 = vector.broadcast %36 : vector<1x4xf32> to vector<8x4xf32>
    %38 = arith.addf %28, %37 : vector<8x4xf32>
    %39 = vector.broadcast %19 : vector<1x4xf32> to vector<8x4xf32>
    %40 = arith.minimumf %38, %39 : vector<8x4xf32>
    %41 = vector.broadcast %20 : vector<1x4xf32> to vector<8x4xf32>
    %42 = arith.maximumf %40, %41 : vector<8x4xf32>
    %43 = tpu.concatenate %42, %28, %23 in 1 : vector<8x4xf32>, vector<8x4xf32>, vector<8x4xf32> -> vector<8x12xf32>
    %c0_23 = arith.constant 0 : index
    %c0_24 = arith.constant 0 : index
    %44 = vector.load %arg5[%c0_23, %c0_24] : memref<8x12xf32, #tpu.memory_space<vmem>>, vector<8x12xf32>
    tpu.vector_store %arg5[%c0_23, %c0_24], %43 {strides = array<i32>} : memref<8x12xf32, #tpu.memory_space<vmem>>, vector<8x12xf32>,
    return
  }
}

</mosaic_0001>

<bundles_post_ra>
// kernel: tpu_custom_call.1
= control target key start
LH: loop header
LB: loop body
LE: loop exit
PB: predicated region body
PF: predicated region fallthrough
CT: control target
= control target key end

     0   :  { %v437_v2 = vmov 0.0|0.0   ;;  %vm438_vm0 = vmmov 0   ;;  %v439_v4 = vmov 0.0   ;;  %s548_s0 = inlined_call_operand.vmem [shape: f32[8,16], index: 0, kind: input, shape index: {}]   ;;  %s549_s1 = inlined_call_operand.vmem [shape: f32[56,32], index: 1, kind: input, shape index: {}]   ;;  %s550_s2 = inlined_call_operand.vmem [shape: f32[40,4], index: 2, kind: input, shape index: {}]   ;;  %s551_s3 = inlined_call_operand.vmem [shape: f32[1,4], index: 3, kind: input, shape index: {}]   ;;  %s552_s4 = inlined_call_operand.<no memory space> [shape: f32[1,1], index: 4, kind: input, shape index: {}]   ;;  %s553_s5 = inlined_call_operand.hbm [shape: f32[8,12], index: 5, kind: output, shape index: {}]  }
   0x1   :  { %v23_v0 = vld [vmem:[%s549_s1] sm:$0xff]  ;;  %v24_v1 = vld [vmem:[%s549_s1 + $0x8] sm:$0xff]  ;;  %390 = vmatprep.subr.bf16.mxu0 %v437_v2  ;;  %365 = vmatprep.mubr.msk.f32.mxu0 %vm438_vm0, %v439_v4  ;;  %v25_v5 = vld [vmem:[%s549_s1 + $0x10] sm:$0xff] }
   0x2   :  { %v391_v3 = vpack.c.bf16 %v24_v1, %v23_v0  ;;  %v26_v6 = vld [vmem:[%s549_s1 + $0x18] sm:$0xff]  ;;  %393 = vmatprep.subr.bf16.mxu1 %v437_v2  ;;  %376 = vmatprep.mubr.msk.f32.mxu1 %vm438_vm0, %v439_v4 }
   0x3   :  { %v394_v7 = vpack.c.bf16 %v26_v6, %v25_v5 }
   0x4   :  { %11 = vsyncpa [#allocation4], 0  ;;  %392 = vmatpush3.bf16.msra.mxu0 %v391_v3  ;;  %v22_v8 = vld [vmem:[%s548_s0] sm:$0xff]  ;;  %vm35_vm1 = vcmask 130048   ;;  %v28_v10 = vld [vmem:[%s549_s1 + $0x28] sm:$0xff]  ;;  %vm114_vm2 = vcmask 261120   ;;  %v293_v37 = vlaneseq  ;;  %v290_v41 = vstv %s552_s4 }
   0x5   :  { %395 = vmatpush3.bf16.msra.mxu1 %v394_v7  ;;  %399 = vmatprep.subr.bf16.mxu0 %v437_v2  ;;  %v27_v9 = vld [vmem:[%s549_s1 + $0x20] sm:$0xff]  ;;  %v190_v13 = vld [vmem:[%s550_s2 + $0x8] sm:$0xff]  ;;  %v337_v15 = vld [vmem:[%s549_s1 + $0x30] ss:$0 sm:$0xff]  ;;  %s440_s23 = smov 4   ;;  %s441_s24 = smov 8  }
   0x6   :  { %396 = vmatprep.subr.bf16.mxu1 %v437_v2  ;;  %v397_v11 = vpack.c.bf16 %v28_v10, %v27_v9  ;;  %v189_v12 = vld [vmem:[%s550_s2] sm:$0xff]  ;;  %v191_v20 = vld [vmem:[%s550_s2 + $0x10] sm:$0xff]  ;;  %v192_v21 = vld [vmem:[%s550_s2 + $0x18] sm:$0xff]  ;;  %v294_v40 = vshrl.u32 %v293_v37, 7  ;;  %vm317_vm3 = vcmask 31744   ;;  %vm319_vm4 = vcmask 64512  }
   0x7   :  { %366 = vmatmul.mubr.msk.f32.vlgmr.msra.gmra.mrb[0].mxu0 %vm35_vm1, %v22_v8  ;;  %v400_v14 = vpack.c.bf16 %v190_v13, %v189_v12  ;;  %v403_v22 = vpack.c.bf16 %v192_v21, %v191_v20  ;;  %v339_v23 = vld [vmem:[%s549_s1 + $0x31] ss:$0 sm:$0xff]  ;;  %v341_v28 = vld [vmem:[%s550_s2 + $0x20] ss:$0 sm:$0xff]  ;;  %v343_v32 = vld [vmem:[%s550_s2 + $0x21] ss:$0 sm:$0xff] }
   0x8   :  { %387 = vmatprep.mubr.msk.f32.mxu0 %vm438_vm0, %v439_v4  ;;  %v344_v34 = vld [vmem:[%s550_s2 + $0x22] ss:$0 sm:$0xff]  ;;  %v286_v38 = vld [vmem:[%s551_s3] sm:$0x1]  ;;  %v295_v43 = vsub.s32 0, %v294_v40  ;;  %s442_s3 = smov [#allocation3]  }
   0x9   :  { %398 = vmatpush3.bf16.msra.mxu1 %v397_v11  ;;  %401 = vmatpush3.bf16.msra.mxu0 %v400_v14  ;;  %v345_v39 = vclamps-f32 %v286_v38, 0.5  ;;  %v346_v46 = vld [vmem:[%s550_s2 + $0x23] ss:$0 sm:$0xff]  ;;  %v347_v48 = vld [vmem:[%s550_s2 + $0x24] ss:$0 sm:$0xff]  ;;  %s329_s8 = sshll.u32 %s442_s3, 4  ;;  %s330_s8 = int_to_ptr.vmem [resolvable:$true] %s329_s8 }
   0xa   :  { %402 = vmatprep.subr.bf16.mxu0 %v437_v2  ;;  %vm321_vm5 = vcmask 97280   ;;  %s413_s4 = scalar_lea.vmem %s330_s8, 128  ;;  %p418_p1 = scmp.lt.s32.totalorder %s330_s8, %s330_s8 }
   0xb   :  { %v291_v42 = vmul.f32 %v345_v39, %v290_v41  ;;  %p414_p0 = scmp.ne.s32.totalorder %s330_s8, %s413_s4  ;;  %p419_p2 = scmp.lt.s32.totalorder %s413_s4, %s413_s4 }
   0xd   :  { %404 = vmatpush3.bf16.msra.mxu0 %v403_v22  ;;  %v296_v44 = vrot.slane %v291_v42, %v295_v43  ;;  %p420_p3 = por %p419_p2, %p418_p1 }
   0xf   :  { %p421_p4 = pnand %p420_p3, %p414_p0 }
  0xda   :  { %v105_v16 = vpop.f32.mrb[0].mxu0 }
  0xdb   :  { %v106_v17 = vadd.f32 %v337_v15, %v105_v16  ;;  %v367_v18 = vpop.f32.mrb[1].mxu0 }
  0xdd   :  { %v109_v19 = vmax.f32 %v106_v17, 0.0 }
  0xdf   :  { %377 = vmatmul.mubr.msk.f32.vlgmr.msra.gmra.mrb[0].mxu1 %vm114_vm2, %v109_v19 }
 0x1b2   :  { %v184_v24 = vpop.f32.mrb[0].mxu1 }
 0x1b3   :  { %v185_v25 = vadd.f32 %v339_v23, %v184_v24  ;;  %v378_v26 = vpop.f32.mrb[1].mxu1 }
 0x1b5   :  { %v188_v27 = vmax.f32 %v185_v25, 0.0 }
 0x1b7   :  { %388 = vmatmul.mubr.msk.f32.vlgmr.msra.gmra.mrb[2].mxu0 %vm114_vm2, %v188_v27 }
 0x28a   :  { %v271_v29 = vpop.f32.mrb[2].mxu0 }
 0x28b   :  { %v272_v30 = vadd.f32 %v341_v28, %v271_v29  ;;  %v389_v31 = vpop.f32.mrb[3].mxu0 }
 0x28d   :  { %411 = vtanh.f32 %v272_v30 }
 0x297   :  { %v412_v33 = vpop.eup %411 }
 0x298   :  { %v280_v35 = vmul.f32 %v412_v33, %v343_v32 }
 0x29a   :  { %v285_v36 = vadd.f32 %v344_v34, %v280_v35 }
 0x29c   :  { %310 = vrot.lane.b32.xlu0 %v285_v36, %s440_s23  ;;  %v298_v45 = vadd.f32 %v296_v44, %v285_v36 }
 0x29e   :  { %v303_v47 = vmin.f32 %v298_v45, %v346_v46 }
 0x2a0   :  { %314 = vrot.lane.b32.xlu0 %v272_v30, %s441_s24  ;;  %v308_v50 = vmax.f32 %v303_v47, %v347_v48 }
 0x30e   :  { %v311_v49 = vpop.permute.xlu0 %310 }
 0x30f   :  { %v318_v51 = vsel %vm317_vm3, %v308_v50, %v311_v49 }
 0x312   :  { %v315_v52 = vpop.permute.xlu0 %314 }
 0x313   :  { %v320_v53 = vsel %vm319_vm4, %v318_v51, %v315_v52 }
 0x314   :  { %322 = vst.msk [vmem:[#allocation3] sm:$0xff] %vm321_vm5, %v320_v53 }
 0x315   :  { %424 = shalt.err (!%p421_p4)
}
 0x316   :  { %s425_s9 = scalar_lea.hbm %s553_s5, 128 }
 0x317   :  { %p426_p5 = scmp.ne.s32.totalorder %s553_s5, %s425_s9  ;;  %p429_p6 = scmp.lt.u32.totalorder %s425_s9, %s553_s5 }
 0x319   :  { %p431_p7 = pnand %p429_p6, %p426_p5 }
 0x31b   :  { %434 = shalt.err (!%p431_p7)
}
 0x31c   :  { %332 = dma.vmem_to_hbm [thread:$0]  %s330_s8, 128, %s553_s5, [#allocation4]  }
 0x31d   :  { %435 = dma.done.wait [#allocation4], 128  }
 0x31e   :  { %436 = vsyncadd [#allocation4], 4294967168 }
 0x31f   :  { %336 = vsyncpa [#allocation4], 1 }

</bundles_post_ra>
